<compile_context>
chip_gen: v5e
topology: v5e:2x2
jax: 0.10.0
libtpu: 0.0.40
codegen_flags: <defaults>
</compile_context>

<pallas_src>
import jax
import jax.numpy as jnp
import numpy as np
from jax.experimental import pallas as pl
from jax.experimental.pallas import tpu as pltpu


def effnet_head_kernel(f_ref, w_ref, b_ref, o_ref):
    # f_ref: (B, S, C) feature map, spatial flattened, channels lane-dense.
    # w_ref: (1, C) fc weight.  b_ref: (1, 1) fc bias.  o_ref: (B, 1).
    f = f_ref[...].astype(jnp.float32)                      # (B, S, C)
    # AdaptiveAvgPool2d((1, 1)) + flatten(1): mean over the spatial (sublane) axis.
    pooled = jnp.mean(f, axis=1)                            # (B, C)
    # Dropout(p=0.2) is identity in the inference forward pass.
    # fc with D_out == 1: elementwise multiply + lane (XLU) reduction.
    logits = jnp.sum(pooled * w_ref[...].astype(jnp.float32),
                     axis=-1, keepdims=True)                # (B, 1)
    o_ref[...] = (logits + b_ref[...]).astype(o_ref.dtype)  # bias added once


def effnet_head_forward(features_nchw, fc_w, fc_b):
    """features_nchw: [B, C, Hf, Wf] encoder output; fc_w: [C]; fc_b: [1] -> [B, 1]."""
    B, C, Hf, Wf = features_nchw.shape
    S = Hf * Wf

    # Layout plumbing (wrapper side, not compute): NCHW -> [B, S, C] so the
    # channel axis is the lane (last) dimension.
    f = jnp.transpose(features_nchw, (0, 2, 3, 1)).reshape(B, S, C)
    w = fc_w.reshape(1, C)
    b = fc_b.reshape(1, 1).astype(jnp.float32)

    itemsize = int(jnp.dtype(f.dtype).itemsize)
    cost = pl.CostEstimate(
        flops=B * S * C + 3 * B * C,   # spatial sum + scale + dot + bias
        transcendentals=0,
        bytes_accessed=B * S * C * itemsize + C * 4 + 4 + B * itemsize,
    )

    return pl.pallas_call(
        effnet_head_kernel,
        out_shape=jax.ShapeDtypeStruct((B, 1), features_nchw.dtype),
        grid_spec=pltpu.PrefetchScalarGridSpec(
            num_scalar_prefetch=0,
            # Whole problem in one grid step: all data (<1 MiB) fits VMEM, so
            # avoid per-step pipeline overhead entirely.
            grid=(1,),
            in_specs=[
                pl.BlockSpec((B, S, C), lambda i: (0, 0, 0)),
                pl.BlockSpec((1, C), lambda i: (0, 0)),
                pl.BlockSpec((1, 1), lambda i: (0, 0)),
            ],
            out_specs=pl.BlockSpec((B, 1), lambda i: (0, 0)),
        ),
        compiler_params=pltpu.CompilerParams(
            dimension_semantics=("arbitrary",)),
        cost_estimate=cost,
    )(f, w, b)


if __name__ == "__main__":
    key = jax.random.PRNGKey(0)
    kf, kw, kb = jax.random.split(key, 3)

    # Small shapes consistent with the module: EfficientNet-b3 head width is
    # 1536; a small input image gives an encoder feature map of [B, 1536, 8, 8].
    B, C, Hf, Wf = 2, 1536, 8, 8

    features = jax.random.normal(kf, (B, C, Hf, Wf), dtype=jnp.float32)
    fc_w = jax.random.normal(kw, (C,), dtype=jnp.float32) * 0.02
    fc_b = jax.random.normal(kb, (1,), dtype=jnp.float32) * 0.02

    out = effnet_head_forward(features, fc_w, fc_b)
    out = jax.block_until_ready(out)

    # Pure-JAX reference mirroring the PyTorch head (dropout = identity in eval).
    pooled = jnp.mean(features, axis=(2, 3))                     # avg_pool + flatten
    ref = jnp.sum(pooled * fc_w[None, :], axis=-1, keepdims=True) + fc_b  # Linear(C, 1)

    np.testing.assert_allclose(np.asarray(out), np.asarray(ref),
                               rtol=1e-5, atol=1e-5)
    print("KERNEL_OK")
</pallas_src>

<mosaic_0001>
module attributes {stable_mosaic.version = 11 : i64} {
  func.func @effnet_head_kernel(%arg0: i32, %arg1: memref<2x64x1536xf32, #tpu.memory_space<vmem>>, %arg2: memref<1x1536xf32, #tpu.memory_space<vmem>>, %arg3: memref<1x1xf32, #tpu.memory_space<vmem>>, %arg4: memref<2x1xf32, #tpu.memory_space<vmem>>) attributes {dimension_semantics = [#tpu.dimension_semantics<arbitrary>], iteration_bounds = array<i64: 1>, scalar_prefetch = 0 : i64, scratch_operands = 0 : i64, tpu.core_type = #tpu.core_type<tc>, window_params = [{pipeline_mode = #tpu.pipeline_mode<synchronous>, transform_indices = @transform_0, window_bounds = array<i64: 2, 64, 1536>}, {pipeline_mode = #tpu.pipeline_mode<synchronous>, transform_indices = @transform_1, window_bounds = array<i64: 1, 1536>}, {pipeline_mode = #tpu.pipeline_mode<synchronous>, transform_indices = @transform_2, window_bounds = array<i64: 1, 1>}, {pipeline_mode = #tpu.pipeline_mode<synchronous>, transform_indices = @transform_3, window_bounds = array<i64: 2, 1>}]} {
    %c0 = arith.constant 0 : index
    %c0_0 = arith.constant 0 : index
    %c0_1 = arith.constant 0 : index
    %0 = vector.load %arg1[%c0, %c0_0, %c0_1] : memref<2x64x1536xf32, #tpu.memory_space<vmem>>, vector<2x64x1536xf32>
    %cst = arith.constant dense<0.000000e+00> : vector<2x1536xf32>
    %1 = vector.multi_reduction <add>, %0, %cst [1] : vector<2x64x1536xf32> to vector<2x1536xf32>
    %cst_2 = arith.constant 6.400000e+01 : f32
    %2 = vector.broadcast %cst_2 : f32 to vector<2x1536xf32>
    %3 = arith.divf %1, %2 : vector<2x1536xf32>
    %c0_3 = arith.constant 0 : index
    %c0_4 = arith.constant 0 : index
    %4 = vector.load %arg2[%c0_3, %c0_4] : memref<1x1536xf32, #tpu.memory_space<vmem>>, vector<1x1536xf32>
    %5 = vector.broadcast %4 : vector<1x1536xf32> to vector<2x1536xf32>
    %6 = arith.mulf %3, %5 : vector<2x1536xf32>
    %cst_5 = arith.constant dense<0.000000e+00> : vector<2xf32>
    %7 = vector.multi_reduction <add>, %6, %cst_5 [1] : vector<2x1536xf32> to vector<2xf32>
    %8 = vector.shape_cast %7 : vector<2xf32> to vector<2x1xf32>
    %c0_6 = arith.constant 0 : index
    %c0_7 = arith.constant 0 : index
    %9 = vector.load %arg3[%c0_6, %c0_7] : memref<1x1xf32, #tpu.memory_space<vmem>>, vector<1x1xf32>
    %10 = vector.broadcast %9 : vector<1x1xf32> to vector<2x1xf32>
    %11 = arith.addf %8, %10 : vector<2x1xf32>
    %c0_8 = arith.constant 0 : index
    %c0_9 = arith.constant 0 : index
    %12 = vector.load %arg4[%c0_8, %c0_9] : memref<2x1xf32, #tpu.memory_space<vmem>>, vector<2x1xf32>
    tpu.vector_store %arg4[%c0_8, %c0_9], %11 {strides = array<i32>} : memref<2x1xf32, #tpu.memory_space<vmem>>, vector<2x1xf32>,
    return
  }
  func.func @transform_0(%arg0: i32) -> (i32, i32, i32) {
    %c0_i32 = arith.constant 0 : i32
    %c0_i32_0 = arith.constant 0 : i32
    %c0_i32_1 = arith.constant 0 : i32
    %c0_i32_2 = arith.constant 0 : i32
    return %c0_i32, %c0_i32_0, %c0_i32_1 : i32, i32, i32
  }
  func.func @transform_1(%arg0: i32) -> (i32, i32) {
    %c0_i32 = arith.constant 0 : i32
    %c0_i32_0 = arith.constant 0 : i32
    %c0_i32_1 = arith.constant 0 : i32
    return %c0_i32, %c0_i32_0 : i32, i32
  }
  func.func @transform_2(%arg0: i32) -> (i32, i32) {
    %c0_i32 = arith.constant 0 : i32
    %c0_i32_0 = arith.constant 0 : i32
    %c0_i32_1 = arith.constant 0 : i32
    return %c0_i32, %c0_i32_0 : i32, i32
  }
  func.func @transform_3(%arg0: i32) -> (i32, i32) {
    %c0_i32 = arith.constant 0 : i32
    %c0_i32_0 = arith.constant 0 : i32
    %c0_i32_1 = arith.constant 0 : i32
    return %c0_i32, %c0_i32_0 : i32, i32
  }
}

</mosaic_0001>

<bundles_post_ra>
// kernel: tpu_custom_call.1
= control target key start
LH: loop header
LB: loop body
LE: loop exit
PB: predicated region body
PF: predicated region fallthrough
CT: control target
= control target key end

     0   :  { %s974_s0 = inlined_call_operand.hbm [shape: f32[2,64,1536], index: 0, kind: input, shape index: {}]   ;;  %s975_s1 = inlined_call_operand.hbm [shape: f32[1,1536], index: 1, kind: input, shape index: {}]   ;;  %s976_s2 = inlined_call_operand.<no memory space> [shape: f32[1,1], index: 2, kind: input, shape index: {}]   ;;  %s977_s3 = inlined_call_operand.vmem [shape: f32[2,1], index: 3, kind: output, shape index: {}]  }
   0x1   :  { %v8_v0 = vstv %s976_s2 }
   0x2   :  { %9 = vst [vmem:[#allocation2] sm:$0x1] %v8_v0 }
   0x3   :  { %10 = vsyncpa [#allocation4], 0  ;;  %s16_s16 = sshll.u32 %s974_s0, 4  ;;  %s17_s16 = int_to_ptr.hbm [resolvable:$true] %s16_s16 }
   0x4   :  { %11 = vsyncpa [#allocation6], 0  ;;  %s793_s17 = smov [#allocation3]   ;;  %s30_s21 = sshll.u32 %s975_s1, 4  ;;  %s31_s21 = int_to_ptr.hbm [resolvable:$true] %s30_s21 }
   0x5   :  { %s18_s18 = sshll.u32 %s793_s17, 4  ;;  %s794_s22 = smov 1536   ;;  %s19_s18 = int_to_ptr.vmem [resolvable:$true] %s18_s18 }
   0x6   :  { %s795_s23 = smov 96   ;;  %s796_s2 = smov [#allocation5]  }
   0x7   :  { %24 = dma.hbm_to_vmem [thread:$0]  %s17_s16, 24576, %s19_s18, [#allocation4], %s794_s22, %s794_s22, %s795_s23  }
   0x8   :  { %s32_s24 = sshll.u32 %s796_s2, 4  ;;  %s33_s24 = int_to_ptr.vmem [resolvable:$true] %s32_s24 }
   0x9   :  { %35 = dma.hbm_to_vmem [thread:$0]  %s31_s21, 192, %s33_s24, [#allocation6]  }
   0xa   :  { %789 = dma.done.wait [#allocation4], 24576  }
   0xb   :  { %790 = vsyncadd [#allocation4], 4294942720 }
   0xc   :  { %791 = dma.done.wait [#allocation6], 192  }
   0xd   :  { %792 = vsyncadd [#allocation6], 4294967104  ;;  %v46_v1 = vld [vmem:[#allocation3] sm:$0xff]  ;;  %v47_v2 = vld [vmem:[#allocation3 + $0x8] sm:$0xff]  ;;  %vm658_vm1 = vcmask 1041409   ;;  %vm694_vm2 = vcmask 1041408  }
   0xe   :  { %v58_v3 = vld [vmem:[#allocation3 + $0x60] sm:$0xff]  ;;  %v59_v4 = vld [vmem:[#allocation3 + $0x68] sm:$0xff]  ;;  %v48_v5 = vld [vmem:[#allocation3 + $0x10] sm:$0xff]  ;;  %vm725_vm3 = vcmask 1024  }
   0xf   :  { %v60_v6 = vld [vmem:[#allocation3 + $0x70] sm:$0xff]  ;;  %v49_v7 = vld [vmem:[#allocation3 + $0x18] sm:$0xff]  ;;  %v238_v8 = vadd.f32 %v58_v3, %v46_v1  ;;  %v251_v9 = vadd.f32 %v59_v4, %v47_v2  ;;  %v70_v11 = vld [vmem:[#allocation3 + $0xc0] sm:$0xff] }
  0x10   :  { %v61_v10 = vld [vmem:[#allocation3 + $0x78] sm:$0xff]  ;;  %v71_v12 = vld [vmem:[#allocation3 + $0xc8] sm:$0xff]  ;;  %v264_v13 = vadd.f32 %v60_v6, %v48_v5  ;;  %v72_v14 = vld [vmem:[#allocation3 + $0xd0] sm:$0xff] }
  0x11   :  { %v73_v15 = vld [vmem:[#allocation3 + $0xd8] sm:$0xff]  ;;  %v50_v16 = vld [vmem:[#allocation3 + $0x20] sm:$0xff]  ;;  %v239_v18 = vadd.f32 %v238_v8, %v70_v11  ;;  %v252_v19 = vadd.f32 %v251_v9, %v71_v12  ;;  %v277_v20 = vadd.f32 %v61_v10, %v49_v7  ;;  %v83_v22 = vld [vmem:[#allocation3 + $0x128] sm:$0xff] }
  0x12   :  { %v62_v17 = vld [vmem:[#allocation3 + $0x80] sm:$0xff]  ;;  %v51_v23 = vld [vmem:[#allocation3 + $0x28] sm:$0xff]  ;;  %v265_v26 = vadd.f32 %v264_v13, %v72_v14  ;;  %v52_v28 = vld [vmem:[#allocation3 + $0x30] sm:$0xff] }
  0x13   :  { %v82_v21 = vld [vmem:[#allocation3 + $0x120] sm:$0xff]  ;;  %v63_v24 = vld [vmem:[#allocation3 + $0x88] sm:$0xff]  ;;  %v278_v27 = vadd.f32 %v277_v20, %v73_v15  ;;  %v84_v29 = vld [vmem:[#allocation3 + $0x130] sm:$0xff]  ;;  %v290_v31 = vadd.f32 %v62_v17, %v50_v16  ;;  %v253_v36 = vadd.f32 %v252_v19, %v83_v22 }
  0x14   :  { %v74_v25 = vld [vmem:[#allocation3 + $0xe0] sm:$0xff]  ;;  %v85_v30 = vld [vmem:[#allocation3 + $0x138] sm:$0xff]  ;;  %v64_v32 = vld [vmem:[#allocation3 + $0x90] sm:$0xff]  ;;  %v240_v35 = vadd.f32 %v239_v18, %v82_v21  ;;  %v303_v41 = vadd.f32 %v63_v24, %v51_v23  ;;  %v266_v45 = vadd.f32 %v265_v26, %v84_v29 }
  0x15   :  { %v75_v33 = vld [vmem:[#allocation3 + $0xe8] sm:$0xff]  ;;  %v86_v34 = vld [vmem:[#allocation3 + $0x140] sm:$0xff]  ;;  %v53_v37 = vld [vmem:[#allocation3 + $0x38] sm:$0xff]  ;;  %v291_v40 = vadd.f32 %v290_v31, %v74_v25  ;;  %v279_v46 = vadd.f32 %v278_v27, %v85_v30  ;;  %v316_v52 = vadd.f32 %v64_v32, %v52_v28 }
  0x16   :  { %v94_v38 = vld [vmem:[#allocation3 + $0x180] sm:$0xff]  ;;  %v95_v39 = vld [vmem:[#allocation3 + $0x188] sm:$0xff]  ;;  %v65_v42 = vld [vmem:[#allocation3 + $0x98] sm:$0xff]  ;;  %v304_v51 = vadd.f32 %v303_v41, %v75_v33 }
  0x17   :  { %v76_v43 = vld [vmem:[#allocation3 + $0xf0] sm:$0xff]  ;;  %v87_v44 = vld [vmem:[#allocation3 + $0x148] sm:$0xff]  ;;  %v97_v48 = vld [vmem:[#allocation3 + $0x198] sm:$0xff]  ;;  %v292_v50 = vadd.f32 %v291_v40, %v86_v34  ;;  %v241_v55 = vadd.f32 %v240_v35, %v94_v38  ;;  %v254_v56 = vadd.f32 %v253_v36, %v95_v39  ;;  %v329_v62 = vadd.f32 %v65_v42, %v53_v37 }
  0x18   :  { %v96_v47 = vld [vmem:[#allocation3 + $0x190] sm:$0xff]  ;;  %v98_v49 = vld [vmem:[#allocation3 + $0x1a0] sm:$0xff]  ;;  %v77_v53 = vld [vmem:[#allocation3 + $0xf8] sm:$0xff]  ;;  %v305_v60 = vadd.f32 %v304_v51, %v87_v44  ;;  %v317_v61 = vadd.f32 %v316_v52, %v76_v43  ;;  %v280_v2 = vadd.f32 %v279_v46, %v97_v48 }
  0x19   :  { %v88_v54 = vld [vmem:[#allocation3 + $0x150] sm:$0xff]  ;;  %v99_v57 = vld [vmem:[#allocation3 + $0x1a8] sm:$0xff]  ;;  %v106_v58 = vld [vmem:[#allocation3 + $0x1e0] sm:$0xff]  ;;  %v267_v1 = vadd.f32 %v266_v45, %v96_v47  ;;  %v293_v3 = vadd.f32 %v292_v50, %v98_v49  ;;  %v330_v8 = vadd.f32 %v329_v62, %v77_v53 }
  0x1a   :  { %v107_v59 = vld [vmem:[#allocation3 + $0x1e8] sm:$0xff]  ;;  %v89_v63 = vld [vmem:[#allocation3 + $0x158] sm:$0xff]  ;;  %v100_v0 = vld [vmem:[#allocation3 + $0x1b0] sm:$0xff]  ;;  %v318_v7 = vadd.f32 %v317_v61, %v88_v54  ;;  %v242_v10 = vadd.f32 %v241_v55, %v106_v58  ;;  %v306_v12 = vadd.f32 %v305_v60, %v99_v57 }
  0x1b   :  { %v108_v4 = vld [vmem:[#allocation3 + $0x1f0] sm:$0xff]  ;;  %v109_v5 = vld [vmem:[#allocation3 + $0x1f8] sm:$0xff]  ;;  %v110_v6 = vld [vmem:[#allocation3 + $0x200] sm:$0xff]  ;;  %v255_v11 = vadd.f32 %v254_v56, %v107_v59  ;;  %v331_v17 = vadd.f32 %v330_v8, %v89_v63 }
  0x1c   :  { %v111_v9 = vld [vmem:[#allocation3 + $0x208] sm:$0xff]  ;;  %v112_v13 = vld [vmem:[#allocation3 + $0x210] sm:$0xff]  ;;  %v118_v14 = vld [vmem:[#allocation3 + $0x240] sm:$0xff]  ;;  %v319_v16 = vadd.f32 %v318_v7, %v100_v0  ;;  %v268_v19 = vadd.f32 %v267_v1, %v108_v4  ;;  %v281_v20 = vadd.f32 %v280_v2, %v109_v5  ;;  %v294_v21 = vadd.f32 %v293_v3, %v110_v6 }
  0x1d   :  { %v119_v15 = vld [vmem:[#allocation3 + $0x248] sm:$0xff]  ;;  %v101_v18 = vld [vmem:[#allocation3 + $0x1b8] sm:$0xff]  ;;  %v120_v22 = vld [vmem:[#allocation3 + $0x250] sm:$0xff]  ;;  %v243_v26 = vadd.f32 %v242_v10, %v118_v14  ;;  %v307_v28 = vadd.f32 %v306_v12, %v111_v9 }
  0x1e   :  { %v121_v23 = vld [vmem:[#allocation3 + $0x258] sm:$0xff]  ;;  %v122_v24 = vld [vmem:[#allocation3 + $0x260] sm:$0xff]  ;;  %v123_v25 = vld [vmem:[#allocation3 + $0x268] sm:$0xff]  ;;  %v256_v27 = vadd.f32 %v255_v11, %v119_v15  ;;  %v320_v29 = vadd.f32 %v319_v16, %v112_v13  ;;  %v332_v33 = vadd.f32 %v331_v17, %v101_v18  ;;  %v269_v35 = vadd.f32 %v268_v19, %v120_v22 }
  0x1f   :  { %v124_v30 = vld [vmem:[#allocation3 + $0x270] sm:$0xff]  ;;  %v130_v31 = vld [vmem:[#allocation3 + $0x2a0] sm:$0xff]  ;;  %v131_v32 = vld [vmem:[#allocation3 + $0x2a8] sm:$0xff]  ;;  %v282_v36 = vadd.f32 %v281_v20, %v121_v23  ;;  %v295_v37 = vadd.f32 %v294_v21, %v122_v24  ;;  %v308_v43 = vadd.f32 %v307_v28, %v123_v25 }
  0x20   :  { %v113_v34 = vld [vmem:[#allocation3 + $0x218] sm:$0xff]  ;;  %v132_v38 = vld [vmem:[#allocation3 + $0x2b0] sm:$0xff]  ;;  %v134_v40 = vld [vmem:[#allocation3 + $0x2c0] sm:$0xff]  ;;  %v244_v41 = vadd.f32 %v243_v26, %v130_v31  ;;  %v257_v42 = vadd.f32 %v256_v27, %v131_v32  ;;  %v321_v44 = vadd.f32 %v320_v29, %v124_v30 }
  0x21   :  { %v133_v39 = vld [vmem:[#allocation3 + $0x2b8] sm:$0xff]  ;;  %v135_v45 = vld [vmem:[#allocation3 + $0x2c8] sm:$0xff]  ;;  %v136_v46 = vld [vmem:[#allocation3 + $0x2d0] sm:$0xff]  ;;  %v333_v47 = vadd.f32 %v332_v33, %v113_v34  ;;  %v270_v51 = vadd.f32 %v269_v35, %v132_v38  ;;  %v296_v53 = vadd.f32 %v295_v37, %v134_v40 }
  0x22   :  { %v54_v48 = vld [vmem:[#allocation3 + $0x40] sm:$0xff]  ;;  %v125_v50 = vld [vmem:[#allocation3 + $0x278] sm:$0xff]  ;;  %v283_v52 = vadd.f32 %v282_v36, %v133_v39  ;;  %v55_v54 = vld [vmem:[#allocation3 + $0x48] sm:$0xff]  ;;  %v245_v56 = vrot.slane %v244_v41, 4  ;;  %v258_v57 = vrot.slane %v257_v42, 4  ;;  %v309_v58 = vadd.f32 %v308_v43, %v135_v45 }
  0x23   :  { %v66_v49 = vld [vmem:[#allocation3 + $0xa0] sm:$0xff]  ;;  %v67_v55 = vld [vmem:[#allocation3 + $0xa8] sm:$0xff]  ;;  %v322_v59 = vadd.f32 %v321_v44, %v136_v46  ;;  %v334_v60 = vadd.f32 %v333_v47, %v125_v50  ;;  %v137_v63 = vld [vmem:[#allocation3 + $0x2d8] sm:$0xff]  ;;  %v271_v0 = vrot.slane %v270_v51, 4  ;;  %v297_v2 = vrot.slane %v296_v53, 4 }
  0x24   :  { %v342_v61 = vadd.f32 %v66_v49, %v54_v48  ;;  %v78_v62 = vld [vmem:[#allocation3 + $0x100] sm:$0xff]  ;;  %v284_v1 = vrot.slane %v283_v52, 4  ;;  %v355_v3 = vadd.f32 %v67_v55, %v55_v54  ;;  %v56_v4 = vld [vmem:[#allocation3 + $0x50] sm:$0xff]  ;;  %v79_v6 = vld [vmem:[#allocation3 + $0x108] sm:$0xff]  ;;  %v246_v7 = vadd.f32 %v245_v56, %v244_v41 }
  0x25   :  { %v68_v5 = vld [vmem:[#allocation3 + $0xb0] sm:$0xff]  ;;  %v259_v8 = vadd.f32 %v258_v57, %v257_v42  ;;  %v310_v9 = vrot.slane %v309_v58, 4  ;;  %v323_v10 = vrot.slane %v322_v59, 4  ;;  %v335_v11 = vadd.f32 %v334_v60, %v137_v63  ;;  %v90_v13 = vld [vmem:[#allocation3 + $0x160] sm:$0xff]  ;;  %v91_v20 = vld [vmem:[#allocation3 + $0x168] sm:$0xff] }
  0x26   :  { %v343_v12 = vadd.f32 %v342_v61, %v78_v62  ;;  %v272_v14 = vadd.f32 %v271_v0, %v270_v51  ;;  %v285_v15 = vadd.f32 %v284_v1, %v283_v52  ;;  %v298_v16 = vadd.f32 %v297_v2, %v296_v53  ;;  %v80_v19 = vld [vmem:[#allocation3 + $0x110] sm:$0xff]  ;;  %v57_v27 = vld [vmem:[#allocation3 + $0x58] sm:$0xff]  ;;  %v102_v29 = vld [vmem:[#allocation3 + $0x1c0] sm:$0xff] }
  0x27   :  { %v356_v17 = vadd.f32 %v355_v3, %v79_v6  ;;  %v368_v18 = vadd.f32 %v68_v5, %v56_v4  ;;  %v247_v21 = vrot.slane %v246_v7, 2  ;;  %v260_v22 = vrot.slane %v259_v8, 2  ;;  %v69_v28 = vld [vmem:[#allocation3 + $0xb8] sm:$0xff]  ;;  %v92_v33 = vld [vmem:[#allocation3 + $0x170] sm:$0xff]  ;;  %v103_v34 = vld [vmem:[#allocation3 + $0x1c8] sm:$0xff] }
  0x28   :  { %v311_v23 = vadd.f32 %v310_v9, %v309_v58  ;;  %v324_v24 = vadd.f32 %v323_v10, %v322_v59  ;;  %v336_v25 = vrot.slane %v335_v11, 4  ;;  %v344_v26 = vadd.f32 %v343_v12, %v90_v13  ;;  %v142_v35 = vld [vmem:[#allocation3 + $0x300] sm:$0xff]  ;;  %v143_v38 = vld [vmem:[#allocation3 + $0x308] sm:$0xff]  ;;  %v81_v45 = vld [vmem:[#allocation3 + $0x118] sm:$0xff] }
  0x29   :  { %v273_v30 = vrot.slane %v272_v14, 2  ;;  %v286_v31 = vrot.slane %v285_v15, 2  ;;  %v299_v32 = vrot.slane %v298_v16, 2  ;;  %v357_v36 = vadd.f32 %v356_v17, %v91_v20  ;;  %v154_v39 = vld [vmem:[#allocation3 + $0x360] sm:$0xff]  ;;  %v155_v40 = vld [vmem:[#allocation3 + $0x368] sm:$0xff]  ;;  %v144_v50 = vld [vmem:[#allocation3 + $0x310] sm:$0xff] }
  0x2a   :  { %v369_v37 = vadd.f32 %v368_v18, %v80_v19  ;;  %v248_v41 = vadd.f32 %v247_v21, %v246_v7  ;;  %v261_v42 = vadd.f32 %v260_v22, %v259_v8  ;;  %v312_v43 = vrot.slane %v311_v23, 2  ;;  %v114_v49 = vld [vmem:[#allocation3 + $0x220] sm:$0xff]  ;;  %v156_v51 = vld [vmem:[#allocation3 + $0x370] sm:$0xff]  ;;  %v145_v56 = vld [vmem:[#allocation3 + $0x318] sm:$0xff] }
  0x2b   :  { %v325_v44 = vrot.slane %v324_v24, 2  ;;  %v337_v46 = vadd.f32 %v336_v25, %v335_v11  ;;  %v345_v47 = vadd.f32 %v344_v26, %v102_v29  ;;  %v381_v48 = vadd.f32 %v69_v28, %v57_v27  ;;  %v104_v55 = vld [vmem:[#allocation3 + $0x1d0] sm:$0xff]  ;;  %v157_v57 = vld [vmem:[#allocation3 + $0x378] sm:$0xff]  ;;  %v115_v62 = vld [vmem:[#allocation3 + $0x228] sm:$0xff] }
  0x2c   :  { %v274_v52 = vadd.f32 %v273_v30, %v272_v14  ;;  %v287_v53 = vadd.f32 %v286_v31, %v285_v15  ;;  %v300_v54 = vadd.f32 %v299_v32, %v298_v16  ;;  %v358_v58 = vadd.f32 %v357_v36, %v103_v34  ;;  %v166_v63 = vld [vmem:[#allocation3 + $0x3c0] sm:$0xff]  ;;  %v167_v0 = vld [vmem:[#allocation3 + $0x3c8] sm:$0xff]  ;;  %v93_v9 = vld [vmem:[#allocation3 + $0x178] sm:$0xff] }
  0x2d   :  { %v370_v59 = vadd.f32 %v369_v37, %v92_v33  ;;  %v394_v60 = vadd.f32 %v154_v39, %v142_v35  ;;  %v407_v61 = vadd.f32 %v155_v40, %v143_v38  ;;  %v249_v1 = vrot.slane %v248_v41, 1  ;;  %v126_v10 = vld [vmem:[#allocation3 + $0x280] sm:$0xff]  ;;  %v168_v11 = vld [vmem:[#allocation3 + $0x3d0] sm:$0xff]  ;;  %v127_v17 = vld [vmem:[#allocation3 + $0x288] sm:$0xff] }
  0x2e   :  { %v262_v2 = vrot.slane %v261_v42, 1  ;;  %v313_v3 = vadd.f32 %v312_v43, %v311_v23  ;;  %v326_v4 = vadd.f32 %v325_v44, %v324_v24  ;;  %v338_v5 = vrot.slane %v337_v46, 2  ;;  %v116_v16 = vld [vmem:[#allocation3 + $0x230] sm:$0xff]  ;;  %v169_v18 = vld [vmem:[#allocation3 + $0x3d8] sm:$0xff]  ;;  %v138_v24 = vld [vmem:[#allocation3 + $0x2e0] sm:$0xff] }
  0x2f   :  { %v346_v6 = vadd.f32 %v345_v47, %v114_v49  ;;  %v382_v7 = vadd.f32 %v381_v48, %v81_v45  ;;  %v420_v8 = vadd.f32 %v156_v51, %v144_v50  ;;  %v275_v12 = vrot.slane %v274_v52, 1  ;;  %v105_v23 = vld [vmem:[#allocation3 + $0x1d8] sm:$0xff]  ;;  %v146_v25 = vld [vmem:[#allocation3 + $0x320] sm:$0xff]  ;;  %v179_v27 = vld [vmem:[#allocation3 + $0x428] sm:$0xff] }
  0x30   :  { %v288_v13 = vrot.slane %v287_v53, 1  ;;  %v301_v14 = vrot.slane %v300_v54, 1  ;;  %v433_v15 = vadd.f32 %v157_v57, %v145_v56  ;;  %v359_v19 = vadd.f32 %v358_v58, %v115_v62  ;;  %v178_v26 = vld [vmem:[#allocation3 + $0x420] sm:$0xff]  ;;  %v147_v32 = vld [vmem:[#allocation3 + $0x328] sm:$0xff]  ;;  %v128_v39 = vld [vmem:[#allocation3 + $0x290] sm:$0xff] }
  0x31   :  { %v371_v20 = vadd.f32 %v370_v59, %v104_v55  ;;  %v395_v21 = vadd.f32 %v394_v60, %v166_v63  ;;  %v408_v22 = vadd.f32 %v407_v61, %v167_v0  ;;  %v827_v28 = vadd.f32 %v249_v1, %v248_v41  ;;  %v158_v33 = vld [vmem:[#allocation3 + $0x380] sm:$0xff]  ;;  %v159_v34 = vld [vmem:[#allocation3 + $0x388] sm:$0xff]  ;;  %v148_v43 = vld [vmem:[#allocation3 + $0x330] sm:$0xff] }
  0x32   :  { %v829_v29 = vadd.f32 %v262_v2, %v261_v42  ;;  %v314_v30 = vrot.slane %v313_v3, 1  ;;  %v327_v31 = vrot.slane %v326_v4, 1  ;;  %v831_v35 = vadd.f32 %v338_v5, %v337_v46  ;;  %v139_v40 = vld [vmem:[#allocation3 + $0x2e8] sm:$0xff]  ;;  %v160_v44 = vld [vmem:[#allocation3 + $0x390] sm:$0xff]  ;;  %v149_v49 = vld [vmem:[#allocation3 + $0x338] sm:$0xff] }
  0x33   :  { %v347_v36 = vadd.f32 %v346_v6, %v126_v10  ;;  %v383_v37 = vadd.f32 %v382_v7, %v93_v9  ;;  %v421_v38 = vadd.f32 %v420_v8, %v168_v11  ;;  %v180_v45 = vld [vmem:[#allocation3 + $0x430] sm:$0xff]  ;;  %v833_v47 = vadd.f32 %v275_v12, %v274_v52  ;;  %v170_v50 = vld [vmem:[#allocation3 + $0x3e0] sm:$0xff]  ;;  %v171_v51 = vld [vmem:[#allocation3 + $0x3e8] sm:$0xff] }
  0x34   :  { %v835_v41 = vadd.f32 %v288_v13, %v287_v53  ;;  %v837_v42 = vadd.f32 %v301_v14, %v300_v54  ;;  %v434_v48 = vadd.f32 %v433_v15, %v169_v18  ;;  %v181_v46 = vld [vmem:[#allocation3 + $0x438] sm:$0xff]  ;;  %v360_v55 = vadd.f32 %v359_v19, %v127_v17  ;;  %v190_v61 = vld [vmem:[#allocation3 + $0x480] sm:$0xff]  ;;  %v191_v62 = vld [vmem:[#allocation3 + $0x488] sm:$0xff] }
  0x35   :  { %v372_v56 = vadd.f32 %v371_v20, %v116_v16  ;;  %v396_v57 = vadd.f32 %v395_v21, %v178_v26  ;;  %v409_v58 = vadd.f32 %v408_v22, %v179_v27  ;;  %v117_v59 = vld [vmem:[#allocation3 + $0x238] sm:$0xff]  ;;  %v839_v63 = vadd.f32 %v314_v30, %v313_v3  ;;  %v172_v0 = vld [vmem:[#allocation3 + $0x3f0] sm:$0xff]  ;;  %v182_v1 = vld [vmem:[#allocation3 + $0x440] sm:$0xff] }
  0x36   :  { %v161_v60 = vld [vmem:[#allocation3 + $0x398] sm:$0xff]  ;;  %v841_v52 = vadd.f32 %v327_v31, %v326_v4  ;;  %v446_v53 = vadd.f32 %v158_v33, %v146_v25  ;;  %v459_v54 = vadd.f32 %v159_v34, %v147_v32  ;;  %v183_v2 = vld [vmem:[#allocation3 + $0x448] sm:$0xff]  ;;  %v340_v5 = vrot.slane %v831_v35, 1  ;;  %v140_v9 = vld [vmem:[#allocation3 + $0x2f0] sm:$0xff] }
  0x37   :  { %v844_v6 = vadd.f32 %v347_v36, %v138_v24  ;;  %v384_v7 = vadd.f32 %v383_v37, %v105_v23  ;;  %v422_v8 = vadd.f32 %v421_v38, %v180_v45  ;;  %v150_v10 = vld [vmem:[#allocation3 + $0x340] sm:$0xff]  ;;  %v173_v12 = vld [vmem:[#allocation3 + $0x3f8] sm:$0xff]  ;;  %v192_v13 = vld [vmem:[#allocation3 + $0x490] sm:$0xff]  ;;  %v435_v3 = vadd.f32 %v434_v48, %v181_v46 }
  0x38   :  { %v162_v11 = vld [vmem:[#allocation3 + $0x3a0] sm:$0xff]  ;;  %v447_v14 = vadd.f32 %v446_v53, %v170_v50  ;;  %v460_v4 = vadd.f32 %v459_v54, %v171_v51  ;;  %v472_v15 = vadd.f32 %v160_v44, %v148_v43  ;;  %v184_v16 = vld [vmem:[#allocation3 + $0x450] sm:$0xff]  ;;  %v193_v17 = vld [vmem:[#allocation3 + $0x498] sm:$0xff]  ;;  %v846_v19 = vadd.f32 %v360_v55, %v139_v40 }
  0x39   :  { %v194_v18 = vld [vmem:[#allocation3 + $0x4a0] sm:$0xff]  ;;  %v373_v20 = vadd.f32 %v372_v56, %v128_v39  ;;  %v397_v21 = vadd.f32 %v396_v57, %v190_v61  ;;  %v410_v22 = vadd.f32 %v409_v58, %v191_v62  ;;  %v129_v24 = vld [vmem:[#allocation3 + $0x298] sm:$0xff]  ;;  %v151_v23 = vld [vmem:[#allocation3 + $0x348] sm:$0xff]  ;;  %v485_v33 = vadd.f32 %v161_v60, %v149_v49 }
  0x3a   :  { %v163_v25 = vld [vmem:[#allocation3 + $0x3a8] sm:$0xff]  ;;  %v185_v26 = vld [vmem:[#allocation3 + $0x458] sm:$0xff]  ;;  %v202_v27 = vld [vmem:[#allocation3 + $0x4e0] sm:$0xff]  ;;  %v448_v30 = vadd.f32 %v447_v14, %v182_v1  ;;  %v461_v31 = vadd.f32 %v460_v4, %v183_v2  ;;  %v473_v32 = vadd.f32 %v472_v15, %v172_v0  ;;  %v849_v38 = vadd.f32 %v340_v5, %v831_v35 }
  0x3b   :  { %v195_v34 = vld [vmem:[#allocation3 + $0x4a8] sm:$0xff]  ;;  %v196_v36 = vld [vmem:[#allocation3 + $0x4b0] sm:$0xff]  ;;  %v349_v40 = vrot.slane %v844_v6, 4  ;;  %v385_v39 = vadd.f32 %v384_v7, %v117_v59  ;;  %v423_v43 = vadd.f32 %v422_v8, %v192_v13  ;;  %v174_v48 = vld [vmem:[#allocation3 + $0x400] sm:$0xff]  ;;  %v436_v46 = vadd.f32 %v435_v3, %v193_v17 }
  0x3c   :  { %v203_v37 = vld [vmem:[#allocation3 + $0x4e8] sm:$0xff]  ;;  %v152_v44 = vld [vmem:[#allocation3 + $0x350] sm:$0xff]  ;;  %v197_v51 = vld [vmem:[#allocation3 + $0x4b8] sm:$0xff]  ;;  %v449_v55 = vadd.f32 %v448_v30, %v194_v18  ;;  %v474_v56 = vadd.f32 %v473_v32, %v184_v16  ;;  %v486_v57 = vadd.f32 %v485_v33, %v173_v12  ;;  %v362_v61 = vrot.slane %v846_v19, 4 }
  0x3d   :  { %v164_v45 = vld [vmem:[#allocation3 + $0x3b0] sm:$0xff]  ;;  %v175_v50 = vld [vmem:[#allocation3 + $0x408] sm:$0xff]  ;;  %v205_v58 = vld [vmem:[#allocation3 + $0x4f8] sm:$0xff]  ;;  %v853_v35 = vadd.f32 %v373_v20, %v140_v9  ;;  %v398_v62 = vadd.f32 %v397_v21, %v202_v27  ;;  %v498_v53 = vadd.f32 %v162_v11, %v150_v10  ;;  %v411_v7 = vadd.f32 %v410_v22, %v203_v37 }
  0x3e   :  { %v204_v49 = vld [vmem:[#allocation3 + $0x4f0] sm:$0xff]  ;;  %v206_v60 = vld [vmem:[#allocation3 + $0x500] sm:$0xff]  ;;  %v153_v59 = vld [vmem:[#allocation3 + $0x358] sm:$0xff]  ;;  %v462_v8 = vadd.f32 %v461_v31, %v195_v34  ;;  %v475_v13 = vadd.f32 %v474_v56, %v196_v36  ;;  %v487_v3 = vadd.f32 %v486_v57, %v185_v26  ;;  %v856_v16 = vadd.f32 %v349_v40, %v844_v6 }
  0x3f   :  { %v165_v54 = vld [vmem:[#allocation3 + $0x3b8] sm:$0xff]  ;;  %v176_v0 = vld [vmem:[#allocation3 + $0x410] sm:$0xff]  ;;  %v186_v1 = vld [vmem:[#allocation3 + $0x460] sm:$0xff]  ;;  %v386_v9 = vadd.f32 %v385_v39, %v129_v24  ;;  %v499_v17 = vadd.f32 %v498_v53, %v174_v48  ;;  %v511_v10 = vadd.f32 %v163_v25, %v151_v23  ;;  %v424_v21 = vadd.f32 %v423_v43, %v204_v49 }
  0x40   :  { %v207_v2 = vld [vmem:[#allocation3 + $0x508] sm:$0xff]  ;;  %v214_v5 = vld [vmem:[#allocation3 + $0x540] sm:$0xff]  ;;  %v141_v12 = vld [vmem:[#allocation3 + $0x2f8] sm:$0xff]  ;;  %v437_v27 = vadd.f32 %v436_v46, %v205_v58  ;;  %v450_v30 = vadd.f32 %v449_v55, %v206_v60  ;;  %v488_v22 = vadd.f32 %v487_v3, %v197_v51  ;;  %v524_v37 = vadd.f32 %v164_v45, %v152_v44 }
  0x41   :  { %v208_v14 = vld [vmem:[#allocation3 + $0x510] sm:$0xff]  ;;  %v209_v4 = vld [vmem:[#allocation3 + $0x518] sm:$0xff]  ;;  %v215_v15 = vld [vmem:[#allocation3 + $0x548] sm:$0xff]  ;;  %v399_v33 = vadd.f32 %v398_v62, %v214_v5  ;;  %v500_v34 = vadd.f32 %v499_v17, %v186_v1  ;;  %v512_v36 = vadd.f32 %v511_v10, %v175_v50  ;;  %v463_v39 = vadd.f32 %v462_v8, %v207_v2 }
  0x42   :  { %v177_v11 = vld [vmem:[#allocation3 + $0x418] sm:$0xff]  ;;  %v187_v18 = vld [vmem:[#allocation3 + $0x468] sm:$0xff]  ;;  %v198_v20 = vld [vmem:[#allocation3 + $0x4c0] sm:$0xff]  ;;  %v412_v24 = vadd.f32 %v411_v7, %v215_v15  ;;  %v476_v23 = vadd.f32 %v475_v13, %v208_v14  ;;  %v489_v25 = vadd.f32 %v488_v22, %v209_v4  ;;  %v525_v51 = vadd.f32 %v524_v37, %v176_v0 }
  0x43   :  { %v216_v31 = vld [vmem:[#allocation3 + $0x550] sm:$0xff]  ;;  %v217_v32 = vld [vmem:[#allocation3 + $0x558] sm:$0xff]  ;;  %v218_v26 = vld [vmem:[#allocation3 + $0x560] sm:$0xff]  ;;  %v501_v46 = vadd.f32 %v500_v34, %v198_v20  ;;  %v513_v55 = vadd.f32 %v512_v36, %v187_v18  ;;  %v537_v49 = vadd.f32 %v165_v54, %v153_v59  ;;  %v387_v53 = vadd.f32 %v386_v9, %v141_v12 }
  0x44   :  { %v188_v56 = vld [vmem:[#allocation3 + $0x470] sm:$0xff]  ;;  %v199_v6 = vld [vmem:[#allocation3 + $0x4c8] sm:$0xff]  ;;  %v210_v40 = vld [vmem:[#allocation3 + $0x520] sm:$0xff]  ;;  %v425_v50 = vadd.f32 %v424_v21, %v216_v31  ;;  %v438_v44 = vadd.f32 %v437_v27, %v217_v32  ;;  %v451_v45 = vadd.f32 %v450_v30, %v218_v26  ;;  %v363_v59 = vadd.f32 %v362_v61, %v846_v19 }
  0x45   :  { %v189_v48 = vld [vmem:[#allocation3 + $0x478] sm:$0xff]  ;;  %v219_v57 = vld [vmem:[#allocation3 + $0x568] sm:$0xff]  ;;  %v220_v43 = vld [vmem:[#allocation3 + $0x570] sm:$0xff]  ;;  %v502_v2 = vadd.f32 %v501_v46, %v210_v40  ;;  %v514_v8 = vadd.f32 %v513_v55, %v199_v6  ;;  %v526_v13 = vadd.f32 %v525_v51, %v188_v56  ;;  %v538_v3 = vadd.f32 %v537_v49, %v177_v11 }
  0x46   :  { %v221_v58 = vld [vmem:[#allocation3 + $0x578] sm:$0xff]  ;;  %v226_v60 = vld [vmem:[#allocation3 + $0x5a0] sm:$0xff]  ;;  %v227_v62 = vld [vmem:[#allocation3 + $0x5a8] sm:$0xff]  ;;  %v375_v54 = vrot.slane %v853_v35, 4  ;;  %v464_v0 = vadd.f32 %v463_v39, %v219_v57  ;;  %v477_v12 = vadd.f32 %v476_v23, %v220_v43  ;;  %v351_v11 = vrot.slane %v856_v16, 2 }
  0x47   :  { %v200_v1 = vld [vmem:[#allocation3 + $0x4d0] sm:$0xff]  ;;  %v211_v5 = vld [vmem:[#allocation3 + $0x528] sm:$0xff]  ;;  %v222_v14 = vld [vmem:[#allocation3 + $0x580] sm:$0xff]  ;;  %v400_v18 = vadd.f32 %v399_v33, %v226_v60  ;;  %v413_v20 = vadd.f32 %v412_v24, %v227_v62  ;;  %v490_v21 = vadd.f32 %v489_v25, %v221_v58  ;;  %v539_v27 = vadd.f32 %v538_v3, %v189_v48 }
  0x48   :  { %v228_v7 = vld [vmem:[#allocation3 + $0x5b0] sm:$0xff]  ;;  %v229_v4 = vld [vmem:[#allocation3 + $0x5b8] sm:$0xff]  ;;  %v230_v15 = vld [vmem:[#allocation3 + $0x5c0] sm:$0xff]  ;;  %v515_v31 = vadd.f32 %v514_v8, %v211_v5  ;;  %v527_v32 = vadd.f32 %v526_v13, %v200_v1  ;;  %v388_v19 = vrot.slane %v387_v53, 4  ;;  %v503_v37 = vadd.f32 %v502_v2, %v222_v14 }
  0x49   :  { %v201_v9 = vld [vmem:[#allocation3 + $0x4d8] sm:$0xff]  ;;  %v231_v17 = vld [vmem:[#allocation3 + $0x5c8] sm:$0xff]  ;;  %v232_v10 = vld [vmem:[#allocation3 + $0x5d0] sm:$0xff]  ;;  %v426_v22 = vadd.f32 %v425_v50, %v228_v7  ;;  %v439_v61 = vadd.f32 %v438_v44, %v229_v4  ;;  %v452_v36 = vadd.f32 %v451_v45, %v230_v15  ;;  %v364_v6 = vrot.slane %v363_v59, 2 }
  0x4a   :  { %v233_v30 = vld [vmem:[#allocation3 + $0x5d8] sm:$0xff]  ;;  %v212_v26 = vld [vmem:[#allocation3 + $0x530] sm:$0xff]  ;;  %v223_v34 = vld [vmem:[#allocation3 + $0x588] sm:$0xff]  ;;  %v465_v40 = vadd.f32 %v464_v0, %v231_v17  ;;  %v478_v39 = vadd.f32 %v477_v12, %v232_v10  ;;  %v540_v33 = vadd.f32 %v539_v27, %v201_v9  ;;  %v376_v23 = vadd.f32 %v375_v54, %v853_v35 }
  0x4b   :  { %v234_v56 = vld [vmem:[#allocation3 + $0x5e0] sm:$0xff]  ;;  %v213_v24 = vld [vmem:[#allocation3 + $0x538] sm:$0xff]  ;;  %v401_v25 = vrot.slane %v400_v18, 4  ;;  %v414_v48 = vrot.slane %v413_v20, 4  ;;  %v491_v57 = vadd.f32 %v490_v21, %v233_v30  ;;  %v352_v43 = vadd.f32 %v351_v11, %v856_v16  ;;  %v224_v49 = vld [vmem:[#allocation3 + $0x590] sm:$0xff] }
  0x4c   :  { %v427_v46 = vrot.slane %v426_v22, 4  ;;  %v516_v55 = vadd.f32 %v515_v31, %v223_v34  ;;  %v528_v51 = vadd.f32 %v527_v32, %v212_v26  ;;  %v235_v58 = vld [vmem:[#allocation3 + $0x5e8] sm:$0xff]  ;;  %v389_v60 = vadd.f32 %v388_v19, %v387_v53  ;;  %v225_v2 = vld [vmem:[#allocation3 + $0x598] sm:$0xff]  ;;  %v236_v15 = vld [vmem:[#allocation3 + $0x5f0] sm:$0xff] }
  0x4d   :  { %v440_v62 = vrot.slane %v439_v61, 4  ;;  %v453_v50 = vrot.slane %v452_v36, 4  ;;  %v504_v44 = vadd.f32 %v503_v37, %v234_v56  ;;  %v365_v45 = vadd.f32 %v364_v6, %v363_v59  ;;  %v237_v21 = vld [vmem:[#allocation3 + $0x5f8] sm:$0xff] }
  0x4e   :  { %v466_v1 = vrot.slane %v465_v40, 4  ;;  %v479_v5 = vrot.slane %v478_v39, 4  ;;  %v541_v7 = vadd.f32 %v540_v33, %v213_v24  ;;  %v377_v35 = vrot.slane %v376_v23, 2 }
  0x4f   :  { %v402_v8 = vadd.f32 %v401_v25, %v400_v18  ;;  %v415_v13 = vadd.f32 %v414_v48, %v413_v20  ;;  %v492_v3 = vrot.slane %v491_v57, 4  ;;  %v428_v14 = vadd.f32 %v427_v46, %v426_v22 }
  0x50   :  { %v517_v16 = vadd.f32 %v516_v55, %v235_v58  ;;  %v529_v4 = vadd.f32 %v528_v51, %v224_v49  ;;  %v390_v54 = vrot.slane %v389_v60, 2  ;;  %v441_v0 = vadd.f32 %v440_v62, %v439_v61 }
  0x51   :  { %v454_v12 = vadd.f32 %v453_v50, %v452_v36  ;;  %v505_v53 = vrot.slane %v504_v44, 4  ;;  %v467_v9 = vadd.f32 %v466_v1, %v465_v40  ;;  %v480_v17 = vadd.f32 %v479_v5, %v478_v39 }
  0x52   :  { %v542_v10 = vadd.f32 %v541_v7, %v225_v2  ;;  %v797_v59 = vmov 64.0   ;;  %v353_v27 = vrot.slane %v352_v43, 1  ;;  %v403_v30 = vrot.slane %v402_v8, 2 }
  0x53   :  { %739 = vrcp.f32 %v797_v59  ;;  %v416_v11 = vrot.slane %v415_v13, 2  ;;  %v493_v18 = vadd.f32 %v492_v3, %v491_v57  ;;  %v378_v20 = vadd.f32 %v377_v35, %v376_v23  ;;  %v873_v59 = vld [vmem:[#allocation5] sm:$0xff] }
  0x54   :  { %v429_v31 = vrot.slane %v428_v14, 2  ;;  %v518_v22 = vrot.slane %v517_v16, 4  ;;  %v530_v32 = vadd.f32 %v529_v4, %v236_v15  ;;  %v366_v26 = vrot.slane %v365_v45, 1 }
  0x55   :  { %v442_v34 = vrot.slane %v441_v0, 2  ;;  %v455_v19 = vrot.slane %v454_v12, 2  ;;  %v506_v61 = vadd.f32 %v505_v53, %v504_v44  ;;  %v391_v36 = vadd.f32 %v390_v54, %v389_v60 }
  0x56   :  { %v468_v37 = vrot.slane %v467_v9, 2  ;;  %v481_v56 = vrot.slane %v480_v17, 2  ;;  %v543_v6 = vadd.f32 %v542_v10, %v237_v21  ;;  %v865_v40 = vadd.f32 %v353_v27, %v352_v43 }
  0x57   :  { %v404_v39 = vadd.f32 %v403_v30, %v402_v8  ;;  %v417_v33 = vadd.f32 %v416_v11, %v415_v13  ;;  %v494_v24 = vrot.slane %v493_v18, 2  ;;  %v379_v48 = vrot.slane %v378_v20, 1 }
  0x58   :  { %v430_v57 = vadd.f32 %v429_v31, %v428_v14  ;;  %v519_v23 = vadd.f32 %v518_v22, %v517_v16  ;;  %v531_v46 = vrot.slane %v530_v32, 4  ;;  %v443_v55 = vadd.f32 %v442_v34, %v441_v0 }
  0x59   :  { %v740_v25 = vpop.eup %739  ;;  %v456_v51 = vadd.f32 %v455_v19, %v454_v12  ;;  %v507_v49 = vrot.slane %v506_v61, 2  ;;  %v392_v62 = vrot.slane %v391_v36, 1  ;;  %v469_v50 = vadd.f32 %v468_v37, %v467_v9  ;;  %v876_v19 = vld [vmem:[#allocation5 + $0x8] sm:$0xf] }
  0x5a   :  { %v551_v58 = vmul.f32 64.0, %v740_v25  ;;  %v482_v60 = vadd.f32 %v481_v56, %v480_v17  ;;  %v544_v44 = vrot.slane %v543_v6, 4  ;;  %v405_v1 = vrot.slane %v404_v39, 1 }
  0x5b   :  { %v418_v5 = vrot.slane %v417_v33, 1  ;;  %v495_v43 = vadd.f32 %v494_v24, %v493_v18  ;;  %v867_v2 = vadd.f32 %v366_v26, %v365_v45  ;;  %v431_v35 = vrot.slane %v430_v57, 1 }
  0x5c   :  { %v552_v7 = vsub.f32 1.0, %v551_v58  ;;  %v520_v8 = vrot.slane %v519_v23, 2  ;;  %v532_v13 = vadd.f32 %v531_v46, %v530_v32  ;;  %v444_v3 = vrot.slane %v443_v55, 1 }
  0x5d   :  { %v457_v14 = vrot.slane %v456_v51, 1  ;;  %v508_v16 = vadd.f32 %v507_v49, %v506_v61  ;;  %v869_v15 = vadd.f32 %v379_v48, %v378_v20  ;;  %v470_v54 = vrot.slane %v469_v50, 1 }
  0x5e   :  { %v553_v4 = vmul.f32 %v740_v25, %v552_v7  ;;  %v483_v0 = vrot.slane %v482_v60, 1  ;;  %v545_v12 = vadd.f32 %v544_v44, %v543_v6  ;;  %v871_v53 = vadd.f32 %v392_v62, %v391_v36 }
  0x5f   :  { %v406_v9 = vadd.f32 %v405_v1, %v404_v39  ;;  %v419_v17 = vadd.f32 %v418_v5, %v417_v33  ;;  %v496_v10 = vrot.slane %v495_v43, 1  ;;  %v432_v45 = vadd.f32 %v431_v35, %v430_v57 }
  0x60   :  { %v521_v21 = vadd.f32 %v520_v8, %v519_v23  ;;  %v533_v27 = vrot.slane %v532_v13, 2  ;;  %v554_v30 = vadd.f32 %v740_v25, %v553_v4  ;;  %v445_v11 = vadd.f32 %v444_v3, %v443_v55 }
  0x61   :  { %v458_v18 = vadd.f32 %v457_v14, %v456_v51  ;;  %v509_v31 = vrot.slane %v508_v16, 1  ;;  %vm555_vm0 = vweird.f32 %v740_v25  ;;  %v471_v20 = vadd.f32 %v470_v54, %v469_v50 }
  0x62   :  { %v484_v22 = vadd.f32 %v483_v0, %v482_v60  ;;  %v546_v32 = vrot.slane %v545_v12, 2  ;;  %v585_v26 = vperm.slane %v873_v59, 0  ;;  %v497_v34 = vadd.f32 %v496_v10, %v495_v43 }
  0x63   :  { %v586_v61 = vperm.slane %v873_v59, 1  ;;  %v587_v36 = vperm.slane %v873_v59, 2  ;;  %v588_v37 = vperm.slane %v873_v59, 3  ;;  %v522_v56 = vrot.slane %v521_v21, 1 }
  0x64   :  { %v534_v6 = vadd.f32 %v533_v27, %v532_v13  ;;  %v881_v39 = vsel %vm555_vm0, %v740_v25, %v554_v30  ;;  %v589_v33 = vperm.slane %v873_v59, 4  ;;  %v510_v24 = vadd.f32 %v509_v31, %v508_v16 }
  0x65   :  { %v590_v48 = vperm.slane %v873_v59, 5  ;;  %v591_v57 = vperm.slane %v873_v59, 6  ;;  %v592_v23 = vperm.slane %v873_v59, 7  ;;  %v547_v46 = vadd.f32 %v546_v32, %v545_v12 }
  0x66   :  { %v593_v55 = vperm.slane %v876_v19, 0  ;;  %v594_v51 = vperm.slane %v876_v19, 1  ;;  %v595_v49 = vperm.slane %v876_v19, 2  ;;  %v569_v58 = vmul.f32 %v881_v39, %v406_v9 }
  0x67   :  { %v570_v25 = vmul.f32 %v881_v39, %v419_v17  ;;  %v571_v62 = vmul.f32 %v881_v39, %v432_v45  ;;  %v572_v50 = vmul.f32 %v881_v39, %v445_v11  ;;  %v523_v60 = vadd.f32 %v522_v56, %v521_v21 }
  0x68   :  { %v535_v44 = vrot.slane %v534_v6, 1  ;;  %v557_v1 = vmul.f32 %v881_v39, %v827_v28  ;;  %v558_v5 = vmul.f32 %v881_v39, %v829_v29  ;;  %v559_v43 = vmul.f32 %v881_v39, %v833_v47 }
  0x69   :  { %v573_v7 = vmul.f32 %v881_v39, %v458_v18  ;;  %v596_v35 = vperm.slane %v876_v19, 3  ;;  %v548_v8 = vrot.slane %v547_v46, 1  ;;  %v560_v13 = vmul.f32 %v881_v39, %v835_v41 }
  0x6a   :  { %v574_v3 = vmul.f32 %v881_v39, %v471_v20  ;;  %v621_v14 = vmul.f32 %v585_v26, %v569_v58  ;;  %v622_v28 = vmul.f32 %v586_v61, %v570_v25  ;;  %v623_v16 = vmul.f32 %v587_v36, %v571_v62 }
  0x6b   :  { %v624_v4 = vmul.f32 %v588_v37, %v572_v50  ;;  %v536_v29 = vadd.f32 %v535_v44, %v534_v6  ;;  %v561_v47 = vmul.f32 %v881_v39, %v837_v42  ;;  %v609_v54 = vmul.f32 %v585_v26, %v557_v1 }
  0x6c   :  { %v610_v0 = vmul.f32 %v586_v61, %v558_v5  ;;  %v562_v12 = vmul.f32 %v881_v39, %v839_v63  ;;  %v575_v9 = vmul.f32 %v881_v39, %v484_v22  ;;  %v611_v17 = vmul.f32 %v587_v36, %v559_v43 }
  0x6d   :  { %v625_v41 = vmul.f32 %v589_v33, %v573_v7  ;;  %v576_v10 = vmul.f32 %v881_v39, %v497_v34  ;;  %v657_v45 = vrot.slane %v621_v14, 7  ;;  %v660_v21 = vrot.slane %v622_v28, 7 }
  0x6e   :  { %v662_v27 = vrot.slane %v623_v16, 7  ;;  %v549_v30 = vadd.f32 %v548_v8, %v547_v46  ;;  %v612_v11 = vmul.f32 %v588_v37, %v560_v13  ;;  %v626_v18 = vmul.f32 %v590_v48, %v574_v3 }
  0x6f   :  { %v664_v31 = vrot.slane %v624_v4, 7  ;;  %v563_v42 = vmul.f32 %v881_v39, %v841_v52  ;;  %v577_v20 = vmul.f32 %v881_v39, %v510_v24  ;;  %v659_v63 = vsel %vm658_vm1, %v657_v45, %v609_v54 }
  0x70   :  { %v661_v22 = vsel %vm658_vm1, %v660_v21, %v610_v0  ;;  %v613_v32 = vmul.f32 %v589_v33, %v561_v47  ;;  %v627_v26 = vmul.f32 %v591_v57, %v575_v9  ;;  %v663_v34 = vsel %vm658_vm1, %v662_v27, %v611_v17 }
  0x71   :  { %v666_v61 = vrot.slane %v625_v41, 7  ;;  %v564_v36 = vmul.f32 %v881_v39, %v849_v38  ;;  %v578_v37 = vmul.f32 %v881_v39, %v523_v60  ;;  %v614_v56 = vmul.f32 %v590_v48, %v562_v12 }
  0x72   :  { %v628_v52 = vmul.f32 %v592_v23, %v576_v10  ;;  %v665_v6 = vsel %vm658_vm1, %v664_v31, %v612_v11  ;;  %v668_v24 = vrot.slane %v626_v18, 7  ;;  %v695_v46 = vsel %vm694_vm2, %v659_v63, 0.0 }
  0x73   :  { %v696_v33 = vsel %vm694_vm2, %v661_v22, 0.0  ;;  %v565_v58 = vmul.f32 %v881_v39, %v865_v40  ;;  %v579_v25 = vmul.f32 %v881_v39, %v536_v29  ;;  %v615_v62 = vmul.f32 %v591_v57, %v563_v42  ;;  %v738_v22 = vld [vmem:[#allocation2] ss:$0 sm:$0xff] }
  0x74   :  { %v698_v38 = vsel %vm694_vm2, %v663_v34, 0.0  ;;  %v629_v48 = vmul.f32 %v593_v55, %v577_v20  ;;  %v667_v50 = vsel %vm658_vm1, %v666_v61, %v613_v32  ;;  %v670_v60 = vrot.slane %v627_v26, 7 }
  0x75   :  { %v697_v44 = vadd.f32 %v696_v33, %v695_v46  ;;  %v566_v1 = vmul.f32 %v881_v39, %v867_v2  ;;  %v580_v5 = vmul.f32 %v881_v39, %v549_v30  ;;  %v616_v40 = vmul.f32 %v592_v23, %v564_v36 }
  0x76   :  { %v700_v43 = vsel %vm694_vm2, %v665_v6, 0.0  ;;  %v630_v57 = vmul.f32 %v594_v51, %v578_v37  ;;  %v669_v7 = vsel %vm658_vm1, %v668_v24, %v614_v56  ;;  %v672_v8 = vrot.slane %v628_v52, 7 }
  0x77   :  { %v699_v13 = vadd.f32 %v698_v38, %v697_v44  ;;  %v567_v3 = vmul.f32 %v881_v39, %v869_v15  ;;  %v617_v2 = vmul.f32 %v593_v55, %v565_v58  ;;  %v702_v14 = vsel %vm694_vm2, %v667_v50, 0.0 }
  0x78   :  { %v631_v59 = vmul.f32 %v595_v49, %v579_v25  ;;  %v671_v23 = vsel %vm658_vm1, %v670_v60, %v615_v62  ;;  %v674_v28 = vrot.slane %v629_v48, 7  ;;  %v568_v4 = vmul.f32 %v881_v39, %v871_v53 }
  0x79   :  { %v701_v16 = vadd.f32 %v700_v43, %v699_v13  ;;  %v618_v29 = vmul.f32 %v594_v51, %v566_v1  ;;  %v704_v15 = vsel %vm694_vm2, %v669_v7, 0.0  ;;  %v632_v55 = vmul.f32 %v596_v35, %v580_v5 }
  0x7a   :  { %v673_v47 = vsel %vm658_vm1, %v672_v8, %v616_v40  ;;  %v676_v54 = vrot.slane %v630_v57, 7  ;;  %v706_v12 = vsel %vm694_vm2, %v671_v23, 0.0  ;;  %v619_v9 = vmul.f32 %v595_v49, %v567_v3 }
  0x7b   :  { %v703_v0 = vadd.f32 %v702_v14, %v701_v16  ;;  %v675_v17 = vsel %vm658_vm1, %v674_v28, %v617_v2  ;;  %v678_v53 = vrot.slane %v631_v59, 7  ;;  %v708_v51 = vsel %vm694_vm2, %v673_v47, 0.0 }
  0x7c   :  { %v620_v41 = vmul.f32 %v596_v35, %v568_v4  ;;  %v677_v10 = vsel %vm658_vm1, %v676_v54, %v618_v29  ;;  %v680_v45 = vrot.slane %v632_v55, 7  ;;  %v710_v27 = vsel %vm694_vm2, %v675_v17, 0.0 }
  0x7d   :  { %v705_v39 = vadd.f32 %v704_v15, %v703_v0  ;;  %v679_v30 = vsel %vm658_vm1, %v678_v53, %v619_v9  ;;  %v712_v49 = vsel %vm694_vm2, %v677_v10, 0.0 }
  0x7e   :  { %v681_v18 = vsel %vm658_vm1, %v680_v45, %v620_v41  ;;  %v714_v42 = vsel %vm694_vm2, %v679_v30, 0.0 }
  0x7f   :  { %v707_v21 = vadd.f32 %v706_v12, %v705_v39  ;;  %v716_v19 = vsel %vm694_vm2, %v681_v18, 0.0 }
  0x81   :  { %v709_v11 = vadd.f32 %v708_v51, %v707_v21 }
  0x83   :  { %v711_v31 = vadd.f32 %v710_v27, %v709_v11 }
  0x85   :  { %v713_v20 = vadd.f32 %v712_v49, %v711_v31 }
  0x87   :  { %v715_v35 = vadd.f32 %v714_v42, %v713_v20 }
  0x89   :  { %v717_v63 = vadd.f32 %v716_v19, %v715_v35 }
  0x8b   :  { %718 = vadd.xlane.f32.xlu0 %v717_v63 }
  0xfe   :  { %v719_v32 = vpop.xlane.xlu0 %718 }
  0xff   :  { %v724_v26 = vadd.f32 %v738_v22, %v719_v32 }
 0x101   :  { %726 = vst.msk [vmem:[%s977_s3] sm:$0x3] %vm725_vm3, %v724_v26 }
 0x102   :  { %731 = vsyncpa [#allocation4], 1 }
 0x103   :  { %732 = vsyncpa [#allocation6], 1 }

</bundles_post_ra>
